<compile_context>
chip_gen: v6e
topology: v6e:2x2x1
jax: 0.10.0
libtpu: 0.0.40
codegen_flags: <defaults>
</compile_context>

<pallas_src>
import jax
import jax.numpy as jnp
import numpy as np
from jax.experimental import pallas as pl
from jax.experimental.pallas import tpu as pltpu

D_IN, D_H, D_OUT = 784, 100, 10   # logical (PyTorch) sizes
D_H_P = 128                       # hidden padded to one lane group
D_OUT_P = 128                     # layer-3 matmul width (sliced to 10 in-kernel)


def mlp_kernel(x_ref, w1_ref, b1_ref, w2_ref, b2_ref, w3_ref, b3_ref, o_ref):
    # x streams in un-padded (TM, 784); cast to bf16 right before the MXU.
    x = x_ref[...].astype(jnp.bfloat16)
    # Layer 1: Linear(784, 100) + ReLU   (bf16 x bf16 -> f32 accumulate)
    h1 = jnp.dot(x, w1_ref[...], preferred_element_type=jnp.float32)
    h1 = jnp.maximum(h1 + b1_ref[...], 0.0)
    # Layer 2: Linear(100, 100) + ReLU
    h2 = jnp.dot(h1.astype(jnp.bfloat16), w2_ref[...],
                 preferred_element_type=jnp.float32)
    h2 = jnp.maximum(h2 + b2_ref[...], 0.0)
    # Layer 3: Linear(100, 10): lane-aligned 128-wide matmul, then store only
    # the 10 real output lanes (masked store on the small output stream).
    out = jnp.dot(h2.astype(jnp.bfloat16), w3_ref[...],
                  preferred_element_type=jnp.float32) + b3_ref[...]
    o_ref[...] = out[:, :D_OUT].astype(o_ref.dtype)


def _pad2d(a, rows, cols, dtype):
    r, c = a.shape
    return jnp.zeros((rows, cols), dtype).at[:r, :c].set(a.astype(dtype))


def pad_params(params):
    """One-time weight/bias padding + bf16 cast (hoisted out of the forward).

    Zero padding keeps padded hidden lanes exactly 0 through bias-add and ReLU.
    """
    return dict(
        w1=_pad2d(params["w1"], D_IN, D_H_P, jnp.bfloat16),
        w2=_pad2d(params["w2"], D_H_P, D_H_P, jnp.bfloat16),
        w3=_pad2d(params["w3"], D_H_P, D_OUT_P, jnp.bfloat16),
        b1=_pad2d(params["b1"], 1, D_H_P, jnp.float32),
        b2=_pad2d(params["b2"], 1, D_H_P, jnp.float32),
        b3=_pad2d(params["b3"], 1, D_OUT_P, jnp.float32),
    )


def _pick_tile(batch, tm):
    """Big tiles for big batches; otherwise split in two (>=2 grid steps for
    v7x megacore) rounded up to a multiple of 16 (bf16-friendly sublanes)."""
    if batch >= 2 * tm:
        return tm
    half = -(-batch // 2)
    return max(16, -(-half // 16) * 16)


def mlp_forward(x, padded_params, *, tm=1024):
    """x: (B, 784) float32 (or bf16). padded_params: output of pad_params()."""
    pp = padded_params
    B = x.shape[0]
    TM = _pick_tile(B, tm)
    Bp = -(-B // TM) * TM
    # Only the batch dim is ever padded (no feature padding, no dtype pass).
    xp = x if Bp == B else jnp.zeros((Bp, D_IN), x.dtype).at[:B].set(x)

    # VMEM budget: double-buffered x tile + double-buffered out tile + resident
    # weights, with headroom. Covers TM up to ~2048 even on v5e; capped for v7x.
    x_itemsize = jnp.dtype(x.dtype).itemsize
    est = (2 * TM * D_IN * x_itemsize
           + 2 * TM * D_OUT * 4
           + 2 * ((D_IN + 2 * D_H_P) * D_H_P * 2 + 3 * D_H_P * 4))
    vmem_limit = int(min(max(32 << 20, est * 3 // 2 + (2 << 20)), 64 << 20))

    const = lambda i: (0, 0)  # weights / biases stay VMEM-resident across the grid
    out = pl.pallas_call(
        mlp_kernel,
        out_shape=jax.ShapeDtypeStruct((Bp, D_OUT), jnp.float32),
        grid=(Bp // TM,),
        in_specs=[
            pl.BlockSpec((TM, D_IN), lambda i: (i, 0)),   # un-padded x streams in
            pl.BlockSpec((D_IN, D_H_P), const),
            pl.BlockSpec((1, D_H_P), const),
            pl.BlockSpec((D_H_P, D_H_P), const),
            pl.BlockSpec((1, D_H_P), const),
            pl.BlockSpec((D_H_P, D_OUT_P), const),
            pl.BlockSpec((1, D_OUT_P), const),
        ],
        out_specs=pl.BlockSpec((TM, D_OUT), lambda i: (i, 0)),
        compiler_params=pltpu.CompilerParams(
            dimension_semantics=("parallel",),
            vmem_limit_bytes=vmem_limit),
    )(xp, pp["w1"], pp["b1"], pp["w2"], pp["b2"], pp["w3"], pp["b3"])
    return out if Bp == B else out[:B]


def init_params(key):
    """Deterministic init mimicking PyTorch Linear default (uniform +-1/sqrt(fan_in))."""
    sizes = [(D_IN, D_H), (D_H, D_H), (D_H, D_OUT)]
    params = {}
    for i, (fan_in, fan_out) in enumerate(sizes, start=1):
        key, kw, kb = jax.random.split(key, 3)
        bound = 1.0 / np.sqrt(fan_in)
        # stored as (in, out) — i.e. transpose of PyTorch's (out, in) weight
        params[f"w{i}"] = jax.random.uniform(
            kw, (fan_in, fan_out), jnp.float32, -bound, bound)
        params[f"b{i}"] = jax.random.uniform(
            kb, (1, fan_out), jnp.float32, -bound, bound)
    return params


def mlp_reference(x, params):
    """Precision-matched reference: bf16 matmul operands, f32 accumulation."""
    bf = jnp.bfloat16
    h1 = jnp.dot(x.astype(bf), params["w1"].astype(bf),
                 preferred_element_type=jnp.float32) + params["b1"]
    h1 = jnp.maximum(h1, 0.0)
    h2 = jnp.dot(h1.astype(bf), params["w2"].astype(bf),
                 preferred_element_type=jnp.float32) + params["b2"]
    h2 = jnp.maximum(h2, 0.0)
    return jnp.dot(h2.astype(bf), params["w3"].astype(bf),
                   preferred_element_type=jnp.float32) + params["b3"]


if __name__ == "__main__":
    key = jax.random.PRNGKey(0)
    kx, kp, kx2 = jax.random.split(key, 3)
    params = init_params(kp)
    padded = pad_params(params)

    # Small single-tile batch.
    batch = 8
    x = jax.random.normal(kx, (batch, D_IN), jnp.float32)
    out = jax.block_until_ready(mlp_forward(x, padded))
    ref = mlp_reference(x, params)
    assert out.shape == (batch, D_OUT), out.shape
    np.testing.assert_allclose(np.asarray(out), np.asarray(ref),
                               rtol=1e-2, atol=1e-2)

    # Non-multiple batch exercising the 2-step grid + row-padding/slice path.
    batch2 = 40
    x2 = jax.random.normal(kx2, (batch2, D_IN), jnp.float32)
    out2 = jax.block_until_ready(mlp_forward(x2, padded))
    ref2 = mlp_reference(x2, params)
    assert out2.shape == (batch2, D_OUT), out2.shape
    np.testing.assert_allclose(np.asarray(out2), np.asarray(ref2),
                               rtol=1e-2, atol=1e-2)

    print("KERNEL_OK")
</pallas_src>

<mosaic_0001>
module attributes {stable_mosaic.version = 11 : i64} {
  func.func @mlp_kernel(%arg0: i32, %arg1: memref<16x784xf32, #tpu.memory_space<vmem>>, %arg2: memref<784x128xbf16, #tpu.memory_space<vmem>>, %arg3: memref<1x128xf32, #tpu.memory_space<vmem>>, %arg4: memref<128x128xbf16, #tpu.memory_space<vmem>>, %arg5: memref<1x128xf32, #tpu.memory_space<vmem>>, %arg6: memref<128x128xbf16, #tpu.memory_space<vmem>>, %arg7: memref<1x128xf32, #tpu.memory_space<vmem>>, %arg8: memref<16x10xf32, #tpu.memory_space<vmem>>) attributes {dimension_semantics = [#tpu.dimension_semantics<parallel>], iteration_bounds = array<i64: 1>, scalar_prefetch = 0 : i64, scratch_operands = 0 : i64, tpu.core_type = #tpu.core_type<tc>, window_params = [{transform_indices = @transform_0, window_bounds = array<i64: 16, 784>}, {pipeline_mode = #tpu.pipeline_mode<synchronous>, transform_indices = @transform_1, window_bounds = array<i64: 784, 128>}, {pipeline_mode = #tpu.pipeline_mode<synchronous>, transform_indices = @transform_2, window_bounds = array<i64: 1, 128>}, {pipeline_mode = #tpu.pipeline_mode<synchronous>, transform_indices = @transform_3, window_bounds = array<i64: 128, 128>}, {pipeline_mode = #tpu.pipeline_mode<synchronous>, transform_indices = @transform_4, window_bounds = array<i64: 1, 128>}, {pipeline_mode = #tpu.pipeline_mode<synchronous>, transform_indices = @transform_5, window_bounds = array<i64: 128, 128>}, {pipeline_mode = #tpu.pipeline_mode<synchronous>, transform_indices = @transform_6, window_bounds = array<i64: 1, 128>}, {transform_indices = @transform_7, window_bounds = array<i64: 16, 10>}]} {
    %c0 = arith.constant 0 : index
    %c0_0 = arith.constant 0 : index
    %0 = vector.load %arg1[%c0, %c0_0] : memref<16x784xf32, #tpu.memory_space<vmem>>, vector<16x784xf32>
    %1 = arith.truncf %0 : vector<16x784xf32> to vector<16x784xbf16>
    %c0_1 = arith.constant 0 : index
    %c0_2 = arith.constant 0 : index
    %2 = vector.load %arg2[%c0_1, %c0_2] : memref<784x128xbf16, #tpu.memory_space<vmem>>, vector<784x128xbf16>
    %cst = arith.constant dense<0.000000e+00> : vector<16x128xf32>
    %3 = tpu.matmul %1, %2, %cst {dimension_numbers = #tpu.dot_dimension_numbers<[1], [0], [0], [1], [0, 0, 1, 1], [], []>} : vector<16x784xbf16>, vector<784x128xbf16>, vector<16x128xf32> -> vector<16x128xf32>
    %c0_3 = arith.constant 0 : index
    %c0_4 = arith.constant 0 : index
    %4 = vector.load %arg3[%c0_3, %c0_4] : memref<1x128xf32, #tpu.memory_space<vmem>>, vector<1x128xf32>
    %5 = vector.broadcast %4 : vector<1x128xf32> to vector<16x128xf32>
    %6 = arith.addf %3, %5 : vector<16x128xf32>
    %cst_5 = arith.constant 0.000000e+00 : f32
    %7 = vector.broadcast %cst_5 : f32 to vector<16x128xf32>
    %8 = arith.maximumf %6, %7 : vector<16x128xf32>
    %9 = arith.truncf %8 : vector<16x128xf32> to vector<16x128xbf16>
    %c0_6 = arith.constant 0 : index
    %c0_7 = arith.constant 0 : index
    %10 = vector.load %arg4[%c0_6, %c0_7] : memref<128x128xbf16, #tpu.memory_space<vmem>>, vector<128x128xbf16>
    %cst_8 = arith.constant dense<0.000000e+00> : vector<16x128xf32>
    %11 = tpu.matmul %9, %10, %cst_8 {dimension_numbers = #tpu.dot_dimension_numbers<[1], [0], [0], [1], [0, 0, 1, 1], [], []>} : vector<16x128xbf16>, vector<128x128xbf16>, vector<16x128xf32> -> vector<16x128xf32>
    %c0_9 = arith.constant 0 : index
    %c0_10 = arith.constant 0 : index
    %12 = vector.load %arg5[%c0_9, %c0_10] : memref<1x128xf32, #tpu.memory_space<vmem>>, vector<1x128xf32>
    %13 = vector.broadcast %12 : vector<1x128xf32> to vector<16x128xf32>
    %14 = arith.addf %11, %13 : vector<16x128xf32>
    %cst_11 = arith.constant 0.000000e+00 : f32
    %15 = vector.broadcast %cst_11 : f32 to vector<16x128xf32>
    %16 = arith.maximumf %14, %15 : vector<16x128xf32>
    %17 = arith.truncf %16 : vector<16x128xf32> to vector<16x128xbf16>
    %c0_12 = arith.constant 0 : index
    %c0_13 = arith.constant 0 : index
    %18 = vector.load %arg6[%c0_12, %c0_13] : memref<128x128xbf16, #tpu.memory_space<vmem>>, vector<128x128xbf16>
    %cst_14 = arith.constant dense<0.000000e+00> : vector<16x128xf32>
    %19 = tpu.matmul %17, %18, %cst_14 {dimension_numbers = #tpu.dot_dimension_numbers<[1], [0], [0], [1], [0, 0, 1, 1], [], []>} : vector<16x128xbf16>, vector<128x128xbf16>, vector<16x128xf32> -> vector<16x128xf32>
    %c0_15 = arith.constant 0 : index
    %c0_16 = arith.constant 0 : index
    %20 = vector.load %arg7[%c0_15, %c0_16] : memref<1x128xf32, #tpu.memory_space<vmem>>, vector<1x128xf32>
    %21 = vector.broadcast %20 : vector<1x128xf32> to vector<16x128xf32>
    %22 = arith.addf %19, %21 : vector<16x128xf32>
    %23 = vector.extract_strided_slice %22 {offsets = [0, 0], sizes = [16, 10], strides = [1, 1]} : vector<16x128xf32> to vector<16x10xf32>
    %c0_17 = arith.constant 0 : index
    %c0_18 = arith.constant 0 : index
    %24 = vector.load %arg8[%c0_17, %c0_18] : memref<16x10xf32, #tpu.memory_space<vmem>>, vector<16x10xf32>
    tpu.vector_store %arg8[%c0_17, %c0_18], %23 {strides = array<i32>} : memref<16x10xf32, #tpu.memory_space<vmem>>, vector<16x10xf32>,
    return
  }
  func.func @transform_0(%arg0: i32) -> (i32, i32) {
    %c0_i32 = arith.constant 0 : i32
    %c0_i32_0 = arith.constant 0 : i32
    return %arg0, %c0_i32 : i32, i32
  }
  func.func @transform_1(%arg0: i32) -> (i32, i32) {
    %c0_i32 = arith.constant 0 : i32
    %c0_i32_0 = arith.constant 0 : i32
    %c0_i32_1 = arith.constant 0 : i32
    return %c0_i32, %c0_i32_0 : i32, i32
  }
  func.func @transform_2(%arg0: i32) -> (i32, i32) {
    %c0_i32 = arith.constant 0 : i32
    %c0_i32_0 = arith.constant 0 : i32
    %c0_i32_1 = arith.constant 0 : i32
    return %c0_i32, %c0_i32_0 : i32, i32
  }
  func.func @transform_3(%arg0: i32) -> (i32, i32) {
    %c0_i32 = arith.constant 0 : i32
    %c0_i32_0 = arith.constant 0 : i32
    %c0_i32_1 = arith.constant 0 : i32
    return %c0_i32, %c0_i32_0 : i32, i32
  }
  func.func @transform_4(%arg0: i32) -> (i32, i32) {
    %c0_i32 = arith.constant 0 : i32
    %c0_i32_0 = arith.constant 0 : i32
    %c0_i32_1 = arith.constant 0 : i32
    return %c0_i32, %c0_i32_0 : i32, i32
  }
  func.func @transform_5(%arg0: i32) -> (i32, i32) {
    %c0_i32 = arith.constant 0 : i32
    %c0_i32_0 = arith.constant 0 : i32
    %c0_i32_1 = arith.constant 0 : i32
    return %c0_i32, %c0_i32_0 : i32, i32
  }
  func.func @transform_6(%arg0: i32) -> (i32, i32) {
    %c0_i32 = arith.constant 0 : i32
    %c0_i32_0 = arith.constant 0 : i32
    %c0_i32_1 = arith.constant 0 : i32
    return %c0_i32, %c0_i32_0 : i32, i32
  }
  func.func @transform_7(%arg0: i32) -> (i32, i32) {
    %c0_i32 = arith.constant 0 : i32
    %c0_i32_0 = arith.constant 0 : i32
    return %arg0, %c0_i32 : i32, i32
  }
}

</mosaic_0001>

<bundles_post_ra>
// kernel: tpu_custom_call.1
= control target key start
LH: loop header
LB: loop body
LE: loop exit
PB: predicated region body
PF: predicated region fallthrough
CT: control target
= control target key end

     0   :  { %12 = vsyncpa [#allocation3], 0  ;;  %s1419_s0 = inlined_call_operand.hbm [shape: f32[16,784], index: 0, kind: input, shape index: {}]   ;;  %s1420_s1 = inlined_call_operand.hbm [shape: bf16[784,128], index: 1, kind: input, shape index: {}]   ;;  %s1421_s2 = inlined_call_operand.vmem [shape: f32[1,128], index: 2, kind: input, shape index: {}]   ;;  %s1422_s3 = inlined_call_operand.hbm [shape: bf16[128,128], index: 3, kind: input, shape index: {}]   ;;  %s1423_s4 = inlined_call_operand.vmem [shape: f32[1,128], index: 4, kind: input, shape index: {}]   ;;  %s1424_s5 = inlined_call_operand.hbm [shape: bf16[128,128], index: 5, kind: input, shape index: {}]   ;;  %s1425_s6 = inlined_call_operand.vmem [shape: f32[1,128], index: 6, kind: input, shape index: {}]   ;;  %s1426_s7 = inlined_call_operand.hbm [shape: f32[16,10], index: 7, kind: output, shape index: {}]  }
   0x1   :  { %13 = vsyncpa [#allocation6], 0 }
   0x2   :  { %14 = vsyncpa [#allocation9], 0 }
   0x3   :  { %15 = vsyncpa [#allocation4], 0  ;;  %s1310_s24 = smov [#allocation5]  }
   0x4   :  { %s33_s25 = sshll.u32 %s1310_s24, 4  ;;  %s34_s25 = int_to_ptr.vmem [resolvable:$true] %s33_s25 }
   0x5   :  { %s1210_s26 = scalar_lea.vmem %s34_s25, 6272  ;;  %p1215_p1 = scmp.lt.s32.totalorder %s34_s25, %s34_s25 }
   0x6   :  { %p1211_p0 = scmp.ne.s32.totalorder %s34_s25, %s1210_s26  ;;  %p1216_p2 = scmp.lt.s32.totalorder %s1210_s26, %s1210_s26 }
   0x8   :  { %p1217_p3 = por %p1216_p2, %p1215_p1 }
   0xa   :  { %p1218_p4 = pnand %p1217_p3, %p1211_p0 }
   0xc   :  { %1221 = shalt.err (!%p1218_p4)
}
   0xd   :  { %s1311_s27 = smov 64   ;;  %s1312_s28 = smov 4  }
   0xe   :  { %39 = dma.hbm_to_vmem [thread:$0]  %s1420_s1, 6272, %s34_s25, [#allocation6], %s1311_s27, %s1311_s27, %s1312_s28  }
   0xf   :  { %s1313_s8 = smov [#allocation2]  }
  0x10   :  { %s21_s9 = sshll.u32 %s1313_s8, 4  ;;  %s22_s9 = int_to_ptr.vmem [resolvable:$true] %s21_s9 }
  0x11   :  { %s1230_s10 = scalar_lea.vmem %s22_s9, 1792  ;;  %p1235_p6 = scmp.lt.s32.totalorder %s22_s9, %s22_s9 }
  0x12   :  { %p1231_p5 = scmp.ne.s32.totalorder %s22_s9, %s1230_s10  ;;  %p1236_p7 = scmp.lt.s32.totalorder %s1230_s10, %s1230_s10 }
  0x14   :  { %p1237_p8 = por %p1236_p7, %p1235_p6 }
  0x16   :  { %p1238_p9 = pnand %p1237_p8, %p1231_p5 }
  0x18   :  { %1241 = shalt.err (!%p1238_p9)
}
  0x19   :  { %s1314_s11 = smov 896   ;;  %s1315_s12 = smov 56  }
  0x1a   :  { %27 = dma.hbm_to_vmem [thread:$0]  %s1419_s0, 1792, %s22_s9, [#allocation3], %s1314_s11, %s1314_s11, %s1315_s12  }
  0x1b   :  { %s1316_s15 = smov [#allocation7]   ;;  %s1317_s17 = smov [#allocation8]  }
  0x1c   :  { %s47_s16 = sshll.u32 %s1316_s15, 4  ;;  %s61_s1 = sshll.u32 %s1317_s17, 4  ;;  %s48_s16 = int_to_ptr.vmem [resolvable:$true] %s47_s16  ;;  %s62_s1 = int_to_ptr.vmem [resolvable:$true] %s61_s1 }
  0x1d   :  { %s1250_s18 = scalar_lea.vmem %s48_s16, 1024  ;;  %p1255_p11 = scmp.lt.s32.totalorder %s48_s16, %s48_s16 }
  0x1e   :  { %p1251_p10 = scmp.ne.s32.totalorder %s48_s16, %s1250_s18  ;;  %p1256_p12 = scmp.lt.s32.totalorder %s1250_s18, %s1250_s18 }
  0x20   :  { %p1257_p13 = por %p1256_p12, %p1255_p11 }
  0x22   :  { %p1258_p0 = pnand %p1257_p13, %p1251_p10 }
  0x24   :  { %1261 = shalt.err (!%p1258_p0)
}
  0x25   :  { %53 = dma.hbm_to_vmem [thread:$0]  %s1422_s3, 1024, %s48_s16, [#allocation6], %s1311_s27, %s1311_s27, %s1312_s28  }
  0x26   :  { %s1270_s0 = scalar_lea.vmem %s62_s1, 1024  ;;  %p1275_p2 = scmp.lt.s32.totalorder %s62_s1, %s62_s1 }
  0x27   :  { %p1271_p1 = scmp.ne.s32.totalorder %s62_s1, %s1270_s0  ;;  %p1276_p3 = scmp.lt.s32.totalorder %s1270_s0, %s1270_s0 }
  0x29   :  { %p1277_p4 = por %p1276_p3, %p1275_p2 }
  0x2b   :  { %p1278_p5 = pnand %p1277_p4, %p1271_p1 }
  0x2d   :  { %1281 = shalt.err (!%p1278_p5)
}
  0x2e   :  { %67 = dma.hbm_to_vmem [thread:$0]  %s1424_s5, 1024, %s62_s1, [#allocation9], %s1311_s27, %s1311_s27, %s1312_s28  }
  0x2f   :  { %1302 = dma.done.wait [#allocation3], 1792  }
  0x30   :  { %1303 = vsyncadd [#allocation3], 4294965504 }
  0x31   :  { %1304 = dma.done.wait [#allocation6], 7296  }
  0x32   :  { %1305 = vsyncadd [#allocation6], 4294960000 }
  0x33   :  { %1306 = dma.done.wait [#allocation9], 1024  }
  0x34   :  { %1307 = vsyncadd [#allocation9], 4294966272  ;;  %v1137_v0 = vld [vmem:[#allocation5 + $0x78] sm:$0xff]   ;;  %v1141_v4 = vld [vmem:[#allocation5 + $0x70] sm:$0xff]   ;;  %v1318_v43 = vmov 0.0   ;;  %vm1319_vm0 = vmmov 0  }
  0x35   :  { %v1138_v1 = vld [vmem:[#allocation5 + $0x38] sm:$0xff]   ;;  %992 = vmatprep.subr.bf16.mxu0 %v1137_v0  ;;  %v1142_v5 = vld [vmem:[#allocation5 + $0x30] sm:$0xff]   ;;  %v1145_v8 = vld [vmem:[#allocation5 + $0x68] sm:$0xff]   ;;  %vm503_vm1 = vcmask 130048   ;;  %vm901_vm2 = vcmask 80896   ;;  %s1320_s26 = smov [#allocation10]  }
  0x36   :  { %v1139_v2 = vld [vmem:[#allocation5 + $0xf8] sm:$0xff]   ;;  %993 = vmatpush3.bf16.msra.mxu0 %v1138_v1  ;;  %v1143_v6 = vld [vmem:[#allocation5 + $0xf0] sm:$0xff]   ;;  %v1146_v9 = vld [vmem:[#allocation5 + $0x28] sm:$0xff]  }
  0x37   :  { %v1140_v3 = vld [vmem:[#allocation5 + $0xb8] sm:$0xff]   ;;  %1014 = vmatprep.subr.bf16.mxu1 %v1139_v2  ;;  %994 = vmatprep.subr.bf16.mxu0 %v1141_v4  ;;  %v1144_v7 = vld [vmem:[#allocation5 + $0xb0] sm:$0xff]   ;;  %v1147_v10 = vld [vmem:[#allocation5 + $0xe8] sm:$0xff]  }
  0x38   :  { %1015 = vmatpush3.bf16.msra.mxu1 %v1140_v3  ;;  %v1148_v11 = vld [vmem:[#allocation5 + $0xa8] sm:$0xff]   ;;  %v1149_v12 = vld [vmem:[#allocation5 + $0x60] sm:$0xff]   ;;  %v1153_v16 = vld [vmem:[#allocation5 + $0x58] sm:$0xff]  }
  0x39   :  { %1016 = vmatprep.subr.bf16.mxu1 %v1143_v6  ;;  %v1150_v13 = vld [vmem:[#allocation5 + $0x20] sm:$0xff]   ;;  %v1154_v17 = vld [vmem:[#allocation5 + $0x18] sm:$0xff]   ;;  %v1157_v20 = vld [vmem:[#allocation5 + $0x50] sm:$0xff]  }
  0x3a   :  { %995 = vmatpush3.bf16.msra.mxu0 %v1142_v5  ;;  %v1151_v14 = vld [vmem:[#allocation5 + $0xe0] sm:$0xff]   ;;  %v1155_v18 = vld [vmem:[#allocation5 + $0xd8] sm:$0xff]   ;;  %v1158_v21 = vld [vmem:[#allocation5 + $0x10] sm:$0xff]  }
  0x3b   :  { %996 = vmatprep.subr.bf16.mxu0 %v1145_v8  ;;  %v1152_v15 = vld [vmem:[#allocation5 + $0xa0] sm:$0xff]   ;;  %v1156_v19 = vld [vmem:[#allocation5 + $0x98] sm:$0xff]   ;;  %v1159_v22 = vld [vmem:[#allocation5 + $0xd0] sm:$0xff]  }
  0x3c   :  { %1017 = vmatpush3.bf16.msra.mxu1 %v1144_v7  ;;  %v1160_v23 = vld [vmem:[#allocation5 + $0x90] sm:$0xff]   ;;  %v1161_v24 = vld [vmem:[#allocation5 + $0x48] sm:$0xff]   ;;  %v1165_v28 = vld [vmem:[#allocation5 + $0x40] sm:$0xff]  }
  0x3d   :  { %1018 = vmatprep.subr.bf16.mxu1 %v1147_v10  ;;  %v1162_v25 = vld [vmem:[#allocation5 + $0x8] sm:$0xff]   ;;  %v1166_v29 = vld [vmem:[#allocation5] sm:$0xff]   ;;  %v84_v31 = vld [vmem:[#allocation2 + $0x8] sm:$0xff] }
  0x3e   :  { %997 = vmatpush3.bf16.msra.mxu0 %v1146_v9  ;;  %v1163_v26 = vld [vmem:[#allocation5 + $0xc8] sm:$0xff]   ;;  %v1167_v30 = vld [vmem:[#allocation5 + $0xc0] sm:$0xff]   ;;  %v91_v32 = vld [vmem:[#allocation2 + $0x40] sm:$0xff] }
  0x3f   :  { %998 = vmatprep.subr.bf16.mxu0 %v1149_v12  ;;  %v1164_v27 = vld [vmem:[#allocation5 + $0x88] sm:$0xff]   ;;  %v98_v33 = vpack.c.bf16 %v91_v32, %v84_v31  ;;  %v1168_v34 = vld [vmem:[#allocation5 + $0x80] sm:$0xff]   ;;  %v83_v35 = vld [vmem:[#allocation2] sm:$0xff] }
  0x40   :  { %1019 = vmatpush3.bf16.msra.mxu1 %v1148_v11  ;;  %v90_v36 = vld [vmem:[#allocation2 + $0x38] sm:$0xff]  ;;  %v1169_v38 = vld [vmem:[#allocation5 + $0x178] sm:$0xff]   ;;  %v93_v40 = vld [vmem:[#allocation2 + $0x50] sm:$0xff] }
  0x41   :  { %1020 = vmatprep.subr.bf16.mxu1 %v1151_v14  ;;  %539 = vmatprep.mubr.bf16.mxu0 %v98_v33  ;;  %v97_v37 = vpack.c.bf16 %v90_v36, %v83_v35  ;;  %v86_v39 = vld [vmem:[#allocation2 + $0x18] sm:$0xff]  ;;  %v1170_v42 = vld [vmem:[#allocation5 + $0x138] sm:$0xff]   ;;  %v85_v44 = vld [vmem:[#allocation2 + $0x10] sm:$0xff] }
  0x42   :  { %999 = vmatpush3.bf16.msra.mxu0 %v1150_v13  ;;  %v100_v41 = vpack.c.bf16 %v93_v40, %v86_v39  ;;  %v92_v45 = vld [vmem:[#allocation2 + $0x48] sm:$0xff]  ;;  %v1171_v47 = vld [vmem:[#allocation5 + $0x170] sm:$0xff]   ;;  %v1173_v49 = vld [vmem:[#allocation5 + $0x168] sm:$0xff]  }
  0x43   :  { %1000 = vmatprep.subr.bf16.mxu0 %v1153_v16  ;;  %v99_v46 = vpack.c.bf16 %v92_v45, %v85_v44  ;;  %v1172_v48 = vld [vmem:[#allocation5 + $0x130] sm:$0xff]   ;;  %v1174_v50 = vld [vmem:[#allocation5 + $0x128] sm:$0xff]   ;;  %v1175_v51 = vld [vmem:[#allocation5 + $0x160] sm:$0xff]  }
  0x44   :  { %1021 = vmatpush3.bf16.msra.mxu1 %v1152_v15  ;;  %580 = vmatprep.mubr.bf16.mxu1 %v100_v41  ;;  %v1176_v52 = vld [vmem:[#allocation5 + $0x120] sm:$0xff]   ;;  %v1177_v53 = vld [vmem:[#allocation5 + $0x158] sm:$0xff]   ;;  %v1179_v55 = vld [vmem:[#allocation5 + $0x150] sm:$0xff]  }
  0x45   :  { %1022 = vmatprep.subr.bf16.mxu1 %v1155_v18  ;;  %v1178_v54 = vld [vmem:[#allocation5 + $0x118] sm:$0xff]   ;;  %v1185_v56 = vld [vmem:[#allocation5 + $0x180] sm:$0xff]   ;;  %v1180_v58 = vld [vmem:[#allocation5 + $0x110] sm:$0xff]  }
  0x46   :  { %1001 = vmatpush3.bf16.msra.mxu0 %v1154_v17  ;;  %v88_v57 = vld [vmem:[#allocation2 + $0x28] sm:$0xff]  ;;  %v1181_v59 = vld [vmem:[#allocation5 + $0x148] sm:$0xff]   ;;  %v95_v60 = vld [vmem:[#allocation2 + $0x60] sm:$0xff] }
  0x47   :  { %1002 = vmatprep.subr.bf16.mxu0 %v1157_v20  ;;  %v102_v61 = vpack.c.bf16 %v95_v60, %v88_v57  ;;  %v89_v62 = vld [vmem:[#allocation2 + $0x30] sm:$0xff]  ;;  %v96_v63 = vld [vmem:[#allocation2 + $0x68] sm:$0xff]  ;;  %v1182_v1 = vld [vmem:[#allocation5 + $0x108] sm:$0xff]  }
  0x48   :  { %1023 = vmatpush3.bf16.msra.mxu1 %v1156_v19  ;;  %v103_v0 = vpack.c.bf16 %v96_v63, %v89_v62  ;;  %v1183_v2 = vld [vmem:[#allocation5 + $0x140] sm:$0xff]   ;;  %v87_v4 = vld [vmem:[#allocation2 + $0x20] sm:$0xff]  ;;  %v94_v5 = vld [vmem:[#allocation2 + $0x58] sm:$0xff] }
  0x49   :  { %1024 = vmatprep.subr.bf16.mxu1 %v1159_v22  ;;  %v1184_v3 = vld [vmem:[#allocation5 + $0x100] sm:$0xff]   ;;  %v101_v6 = vpack.c.bf16 %v94_v5, %v87_v4  ;;  %v1187_v8 = vld [vmem:[#allocation7 + $0x30] sm:$0xff]   ;;  %v1188_v9 = vld [vmem:[#allocation7 + $0x28] sm:$0xff]  }
  0x4a   :  { %1003 = vmatpush3.bf16.msra.mxu0 %v1158_v21  ;;  %v1186_v7 = vld [vmem:[#allocation7 + $0x38] sm:$0xff]   ;;  %v1189_v10 = vld [vmem:[#allocation7 + $0x20] sm:$0xff]   ;;  %v1191_v12 = vld [vmem:[#allocation7 + $0x10] sm:$0xff]  }
  0x4b   :  { %1004 = vmatprep.subr.bf16.mxu0 %v1161_v24  ;;  %v1190_v11 = vld [vmem:[#allocation7 + $0x18] sm:$0xff]   ;;  %v1192_v13 = vld [vmem:[#allocation7 + $0x8] sm:$0xff]   ;;  %v1193_v14 = vld [vmem:[#allocation7] sm:$0xff]  }
  0x4c   :  { %1025 = vmatpush3.bf16.msra.mxu1 %v1160_v23  ;;  %v1194_v15 = vld [vmem:[#allocation8 + $0x38] sm:$0xff]   ;;  %v1195_v16 = vld [vmem:[#allocation8 + $0x30] sm:$0xff]   ;;  %v1196_v17 = vld [vmem:[#allocation8 + $0x28] sm:$0xff]  }
  0x4d   :  { %1026 = vmatprep.subr.bf16.mxu1 %v1163_v26  ;;  %v1197_v18 = vld [vmem:[#allocation8 + $0x20] sm:$0xff]   ;;  %v1198_v19 = vld [vmem:[#allocation8 + $0x18] sm:$0xff]   ;;  %v923_v32 = vld [vmem:[%s1421_s2] ss:$0 sm:$0xff] }
  0x4e   :  { %1005 = vmatpush3.bf16.msra.mxu0 %v1162_v25  ;;  %v1201_v57 = vld [vmem:[#allocation8] sm:$0xff]  }
  0x4f   :  { %1006 = vmatprep.subr.bf16.mxu0 %v1165_v28 }
  0x50   :  { %1027 = vmatpush3.bf16.msra.mxu1 %v1164_v27 }
  0x51   :  { %1028 = vmatprep.subr.bf16.mxu1 %v1167_v30 }
  0x52   :  { %1007 = vmatpush3.bf16.msra.mxu0 %v1166_v29 }
  0x53   :  { %1036 = vmatprep.subr.bf16.mxu0 %v1169_v38 }
  0x54   :  { %1029 = vmatpush3.bf16.msra.mxu1 %v1168_v34 }
  0x55   :  { %1078 = vmatprep.subr.bf16.mxu1 %v1318_v43  ;;  %540 = vmatmul.mubr.bf16.vlgmr.msra.gmra.mxu0 %v97_v37 }
  0x56   :  { %1037 = vmatpush3.bf16.msra.mxu0 %v1170_v42  ;;  %621 = vmatprep.mubr.bf16.mxu0 %v102_v61 }
  0x57   :  { %581 = vmatmul.mubr.bf16.vlgmr.msra.gmra.mxu1 %v99_v46  ;;  %1038 = vmatprep.subr.bf16.mxu0 %v1171_v47 }
  0x58   :  { %1080 = vmatprep.mubr.msk.bf16.mxu1 %vm1319_vm0, %v1318_v43  ;;  %1079 = vmatpush3.bf16.msra.mxu1 %v1185_v56  ;;  %v1200_v56 = vld [vmem:[#allocation8 + $0x8] sm:$0xff]  }
  0x59   :  { %1084 = vmatprep.subr.bf16.mxu1 %v1318_v43 }
  0x5a   :  { %1039 = vmatpush3.bf16.msra.mxu0 %v1172_v48 }
  0x5b   :  { %1040 = vmatprep.subr.bf16.mxu0 %v1173_v49 }
  0x5e   :  { %1041 = vmatpush3.bf16.msra.mxu0 %v1174_v50 }
  0x5f   :  { %1042 = vmatprep.subr.bf16.mxu0 %v1175_v51  ;;  %1081 = vmatmul.mubr.msk.bf16.vlgmr.msra.gmra.mxu1 %vm503_vm1, %v103_v0 }
  0x60   :  { %1100 = vmatprep.mubr.msk.bf16.mxu1 %vm1319_vm0, %v1318_v43  ;;  %1085 = vmatpush3.bf16.msra.mxu1 %v1186_v7 }
  0x61   :  { %1086 = vmatprep.subr.bf16.mxu1 %v1318_v43 }
  0x62   :  { %1043 = vmatpush3.bf16.msra.mxu0 %v1176_v52 }
  0x63   :  { %1044 = vmatprep.subr.bf16.mxu0 %v1177_v53 }
  0x64   :  { %1087 = vmatpush3.bf16.msra.mxu1 %v1187_v8 }
  0x65   :  { %1088 = vmatprep.subr.bf16.mxu1 %v1318_v43 }
  0x66   :  { %1045 = vmatpush3.bf16.msra.mxu0 %v1178_v54 }
  0x67   :  { %1046 = vmatprep.subr.bf16.mxu0 %v1179_v55  ;;  %v1199_v55 = vld [vmem:[#allocation8 + $0x10] sm:$0xff]  }
  0x68   :  { %1089 = vmatpush3.bf16.msra.mxu1 %v1188_v9 }
  0x69   :  { %1090 = vmatprep.subr.bf16.mxu1 %v1318_v43 }
  0x6a   :  { %1047 = vmatpush3.bf16.msra.mxu0 %v1180_v58  ;;  %v974_v58 = vld [vmem:[%s1423_s4] ss:$0 sm:$0xff]  ;;  %s909_s4 = sshll.u32 %s1320_s26, 4  ;;  %s910_s4 = int_to_ptr.vmem [resolvable:$true] %s909_s4 }
  0x6b   :  { %1048 = vmatprep.subr.bf16.mxu0 %v1181_v59  ;;  %s1282_s27 = scalar_lea.vmem %s910_s4, 256  ;;  %p1287_p7 = scmp.lt.s32.totalorder %s910_s4, %s910_s4 }
  0x6c   :  { %1091 = vmatpush3.bf16.msra.mxu1 %v1189_v10  ;;  %p1283_p6 = scmp.ne.s32.totalorder %s910_s4, %s1282_s27  ;;  %p1288_p8 = scmp.lt.s32.totalorder %s1282_s27, %s1282_s27 }
  0x6d   :  { %1092 = vmatprep.subr.bf16.mxu1 %v1318_v43 }
  0x6e   :  { %1049 = vmatpush3.bf16.msra.mxu0 %v1182_v1  ;;  %p1289_p9 = por %p1288_p8, %p1287_p7 }
  0x6f   :  { %1050 = vmatprep.subr.bf16.mxu0 %v1183_v2 }
  0x70   :  { %1093 = vmatpush3.bf16.msra.mxu1 %v1190_v11  ;;  %p1290_p10 = pnand %p1289_p9, %p1283_p6 }
  0x71   :  { %1094 = vmatprep.subr.bf16.mxu1 %v1318_v43 }
  0x72   :  { %1051 = vmatpush3.bf16.msra.mxu0 %v1184_v3 }
  0x73   :  { %1104 = vmatprep.subr.bf16.mxu0 %v1318_v43 }
  0x74   :  { %1095 = vmatpush3.bf16.msra.mxu1 %v1191_v12 }
  0x75   :  { %622 = vmatmul.mubr.bf16.vlgmr.msra.gmra.mxu0 %v101_v6  ;;  %1096 = vmatprep.subr.bf16.mxu1 %v1318_v43 }
  0x76   :  { %1120 = vmatprep.mubr.msk.bf16.mxu0 %vm1319_vm0, %v1318_v43  ;;  %1105 = vmatpush3.bf16.msra.mxu0 %v1194_v15 }
  0x77   :  { %1106 = vmatprep.subr.bf16.mxu0 %v1318_v43 }
  0x78   :  { %1097 = vmatpush3.bf16.msra.mxu1 %v1192_v13 }
  0x79   :  { %1098 = vmatprep.subr.bf16.mxu1 %v1318_v43 }
  0x7a   :  { %1107 = vmatpush3.bf16.msra.mxu0 %v1195_v16 }
  0x7b   :  { %1108 = vmatprep.subr.bf16.mxu0 %v1318_v43 }
  0x7c   :  { %1099 = vmatpush3.bf16.msra.mxu1 %v1193_v14 }
  0x7e   :  { %1109 = vmatpush3.bf16.msra.mxu0 %v1196_v17 }
  0x7f   :  { %1110 = vmatprep.subr.bf16.mxu0 %v1318_v43 }
  0x82   :  { %1111 = vmatpush3.bf16.msra.mxu0 %v1197_v18 }
  0x83   :  { %1112 = vmatprep.subr.bf16.mxu0 %v1318_v43 }
  0x86   :  { %1113 = vmatpush3.bf16.msra.mxu0 %v1198_v19 }
  0x87   :  { %1114 = vmatprep.subr.bf16.mxu0 %v1318_v43 }
  0x8a   :  { %1115 = vmatpush3.bf16.msra.mxu0 %v1199_v55 }
  0x8b   :  { %1116 = vmatprep.subr.bf16.mxu0 %v1318_v43 }
  0x8e   :  { %1117 = vmatpush3.bf16.msra.mxu0 %v1200_v56 }
  0x8f   :  { %1118 = vmatprep.subr.bf16.mxu0 %v1318_v43  ;;  %v983_v43 = vld [vmem:[%s1425_s6] ss:$0 sm:$0xff] }
  0x92   :  { %1119 = vmatpush3.bf16.msra.mxu0 %v1201_v57 }
 0x115   :  { %v1008_v23 = vpop.f32.mrf.mxu0 }
 0x117   :  { %v1030_v20 = vpop.f32.mrf.mxu1  ;;  %v1009_v25 = vpop.f32.mrf.mxu0 }
 0x118   :  { %v1010_v31 = vadd.f32 %v1009_v25, %v1008_v23 }
 0x119   :  { %v1031_v21 = vpop.f32.mrf.mxu1  ;;  %v1011_v28 = vpop.f32.mrf.mxu0 }
 0x11a   :  { %v542_v34 = vadd.f32 %v1010_v31, %v923_v32  ;;  %v1032_v35 = vadd.f32 %v1031_v21, %v1030_v20 }
 0x11b   :  { %v1033_v22 = vpop.f32.mrf.mxu1  ;;  %v1012_v33 = vpop.f32.mrf.mxu0 }
 0x11c   :  { %v1013_v36 = vadd.f32 %v1012_v33, %v1011_v28  ;;  %v583_v39 = vadd.f32 %v1032_v35, %v542_v34 }
 0x11d   :  { %v1034_v24 = vpop.f32.mrf.mxu1 }
 0x11e   :  { %v545_v40 = vadd.f32 %v1013_v36, %v923_v32  ;;  %v1035_v41 = vadd.f32 %v1034_v24, %v1033_v22 }
 0x11f   :  { %v664_v26 = vpop.f32.mrf.mxu1 }
 0x120   :  { %v586_v47 = vadd.f32 %v1035_v41, %v545_v40 }
 0x121   :  { %v1082_v27 = vpop.f32.mrf.mxu1 }
 0x123   :  { %v667_v29 = vpop.f32.mrf.mxu1 }
 0x125   :  { %v1083_v30 = vpop.f32.mrf.mxu1 }
 0x135   :  { %v1052_v37 = vpop.f32.mrf.mxu0 }
 0x137   :  { %v1053_v38 = vpop.f32.mrf.mxu0 }
 0x138   :  { %v1054_v42 = vadd.f32 %v1053_v38, %v1052_v37 }
 0x139   :  { %v1055_v44 = vpop.f32.mrf.mxu0 }
 0x13a   :  { %v624_v45 = vadd.f32 %v1054_v42, %v583_v39 }
 0x13b   :  { %v1056_v46 = vpop.f32.mrf.mxu0 }
 0x13c   :  { %v1057_v48 = vadd.f32 %v1056_v46, %v1055_v44  ;;  %v665_v49 = vadd.f32 %v664_v26, %v624_v45 }
 0x13e   :  { %v627_v50 = vadd.f32 %v1057_v48, %v586_v47  ;;  %v671_v52 = vmax.f32 %v665_v49, 0.0 }
 0x140   :  { %v668_v51 = vadd.f32 %v667_v29, %v627_v50 }
 0x142   :  { %v672_v53 = vmax.f32 %v668_v51, 0.0 }
 0x144   :  { %v673_v54 = vpack.c.bf16 %v672_v53, %v671_v52 }
 0x146   :  { %1101 = vmatmul.mubr.bf16.vlgmr.msra.gmra.mxu1 %v673_v54 }
 0x206   :  { %v779_v59 = vpop.f32.mrf.mxu1 }
 0x207   :  { %v780_v61 = vadd.f32 %v974_v58, %v779_v59 }
 0x208   :  { %v1102_v60 = vpop.f32.mrf.mxu1 }
 0x209   :  { %v786_v1 = vmax.f32 %v780_v61, 0.0 }
 0x20a   :  { %v782_v62 = vpop.f32.mrf.mxu1 }
 0x20b   :  { %v783_v63 = vadd.f32 %v974_v58, %v782_v62 }
 0x20c   :  { %v1103_v0 = vpop.f32.mrf.mxu1 }
 0x20d   :  { %v787_v2 = vmax.f32 %v783_v63, 0.0 }
 0x20f   :  { %v788_v3 = vpack.c.bf16 %v787_v2, %v786_v1 }
 0x211   :  { %1121 = vmatmul.mubr.bf16.vlgmr.msra.gmra.mxu0 %v788_v3 }
 0x2d1   :  { %v894_v4 = vpop.f32.mrf.mxu0 }
 0x2d2   :  { %v895_v5 = vadd.f32 %v983_v43, %v894_v4 }
 0x2d3   :  { %v1122_v6 = vpop.f32.mrf.mxu0 }
 0x2d4   :  { %902 = vst.msk [vmem:[#allocation10] sm:$0xff] %vm901_vm2, %v895_v5 }
 0x2d5   :  { %v897_v7 = vpop.f32.mrf.mxu0 }
 0x2d6   :  { %v898_v8 = vadd.f32 %v983_v43, %v897_v7 }
 0x2d7   :  { %v1123_v9 = vpop.f32.mrf.mxu0 }
 0x2d8   :  { %903 = vst.msk [vmem:[#allocation10 + $0x8] sm:$0xff] %vm901_vm2, %v898_v8 }
 0x2d9   :  { %1293 = shalt.err (!%p1290_p10)
}
 0x2da   :  { %s1321_s6 = smov 128   ;;  %s1322_s28 = smov 8  }
 0x2db   :  { %915 = dma.vmem_to_hbm [thread:$0]  %s910_s4, 256, %s1426_s7, [#allocation4], %s1321_s6, %s1321_s6, %s1322_s28  }
 0x2dc   :  { %1308 = dma.done.wait [#allocation4], 256  }
 0x2dd   :  { %1309 = vsyncadd [#allocation4], 4294967040 }
 0x2de   :  { %919 = vsyncpa [#allocation3], 1 }
 0x2df   :  { %920 = vsyncpa [#allocation6], 1 }
 0x2e0   :  { %921 = vsyncpa [#allocation9], 1 }
 0x2e1   :  { %922 = vsyncpa [#allocation4], 1 }

</bundles_post_ra>
